<compile_context>
chip_gen: v5e
topology: v5e:2x2
jax: 0.10.0
libtpu: 0.0.40
codegen_flags: <defaults>
</compile_context>

<pallas_src>
import functools

import jax
import jax.numpy as jnp
from jax.experimental import pallas as pl
from jax.experimental.pallas import tpu as pltpu


def _neg_fill(dtype):
    """Identity element for max in `dtype` (used to pad clipped taps away)."""
    if jnp.issubdtype(dtype, jnp.floating):
        return jnp.array(-jnp.inf, dtype=dtype)
    return jnp.array(jnp.iinfo(dtype).min, dtype=dtype)


def _pool_sublane(v, *, k, s, lo):
    """Sliding max along axis 1 (the sublane axis) of v: (ct, L, M).

    Window k, stride s, right-clipped taps skipped (== replicate padding,
    because the window start is always in range so the edge element is already
    an in-range tap).  Axis 1 is padded with dtype-min so every tap is a
    full-length strided slice -> no partial/masked updates anywhere.
    """
    ct, L, M = v.shape
    need = (lo - 1) * s + k
    if need > L:
        fill = jnp.full((ct, need - L, M), _neg_fill(v.dtype), dtype=v.dtype)
        v = jnp.concatenate([v, fill], axis=1)
    out = None
    for d in range(k):
        stop = d + (lo - 1) * s + 1
        sl = v[:, d:stop:s, :]
        out = sl if out is None else jnp.maximum(out, sl)
    return out


def _maxpool_kernel(x_ref, o_ref, *, k, s):
    """x_ref: (ct, H, W) NCHW block.  o_ref: (ct, Ho, Wo)."""
    _, H, W = x_ref.shape
    _, Ho, Wo = o_ref.shape
    x = x_ref[...]

    if k == 2:
        # Canonical stride-1 case (Ho == H, Wo == W).  Replicate padding is
        # realized by re-appending the edge column / row, then max with the
        # shifted tensor.  Pure value computation -> one full (unmasked) store.
        shift_w = jnp.concatenate([x[:, :, 1:], x[:, :, W - 1:W]], axis=2)
        xw = jnp.maximum(x, shift_w)
        shift_h = jnp.concatenate([xw[:, 1:, :], xw[:, H - 1:H, :]], axis=1)
        out = jnp.maximum(xw, shift_h)
    else:
        # k >= 3 => stride s = k-1 >= 2.  Reduce along H first (cheap strided
        # sublane slices), then swap the last two axes so the strided W
        # reduction also happens on the sublane axis (strided access along the
        # lane axis is the slow/unsupported direction), then swap back.
        hr = _pool_sublane(x, k=k, s=s, lo=Ho)       # (ct, Ho, W)
        t = jnp.swapaxes(hr, 1, 2)                   # (ct, W, Ho)
        t = _pool_sublane(t, k=k, s=s, lo=Wo)        # (ct, Wo, Ho)
        out = jnp.swapaxes(t, 1, 2)                  # (ct, Ho, Wo)

    o_ref[...] = out.astype(o_ref.dtype)


def _round_up(a, m):
    return (a + m - 1) // m * m


def _padded_plane_bytes(h, w, itemsize):
    """VMEM footprint of one (h, w) plane after (sublane, lane) tiling."""
    sub = 8 * max(1, 4 // itemsize)      # bf16 packs 16 rows/vreg, int8 packs 32
    return _round_up(h, sub) * _round_up(w, 128) * itemsize


def _pick_channel_tile(N, C, H, W, itemsize):
    """Channel tile ct for NCHW blocks (ct, H, W).

    In NCHW the channel dim is not the lane axis, so any divisor of C is legal
    and every HBM block stays a single contiguous ct*H*W run.  Pick the largest
    divisor whose *padded* VMEM block is <= ~1 MiB (so ~4-5 live buffers fit
    v5e's 16 MiB scoped default and leave headroom on v7x's 64 MiB), then
    shrink it further if that gives the grid >= 8 steps, so DMA pipelines and
    v7x's two TensorCores both get parallel grid iterations.
    """
    plane = _padded_plane_bytes(H, W, itemsize)
    budget = 1 << 20           # ~1 MiB per input block
    min_steps = 8
    divisors = [d for d in range(1, C + 1) if C % d == 0]
    fitting = [d for d in divisors if d * plane <= budget]
    ct = max(fitting) if fitting else 1
    smaller = [d for d in divisors if d <= ct and N * (C // d) >= min_steps]
    if smaller:
        ct = max(smaller)
    return ct


def max_pool_stride1(x, kernel_size):
    """x: (N, C, H, W).  Returns (N, C, Ho, Wo), matching the PyTorch module."""
    k = int(kernel_size)
    if k < 2:
        # kernel_size=1 implies stride=0, which nn.MaxPool2d rejects as well.
        raise ValueError("MaxPoolStride1 requires kernel_size >= 2")
    s = k - 1          # nn.MaxPool2d(kernel_size=k, stride=k-1)
    pad = k - 1
    N, C, H, W = x.shape
    Ho = (H + pad - k) // s + 1     # PyTorch floor-mode output size
    Wo = (W + pad - k) // s + 1

    ct = _pick_channel_tile(N, C, H, W, x.dtype.itemsize)
    grid = (N, C // ct)

    itemsize = x.dtype.itemsize
    in_blk = ct * _padded_plane_bytes(H, W, itemsize)
    out_blk = ct * _padded_plane_bytes(Ho, Wo, itemsize)
    vmem_est = 2 * (in_blk + out_blk) + (1 << 20)   # double-buffered in/out + slack

    compiler_kwargs = dict(dimension_semantics=("parallel", "parallel"))
    if vmem_est > (12 << 20):
        # Pathological tiny-C / huge-H*W shapes: raise the scoped-VMEM limit
        # (v5e defaults to 16 MiB) instead of failing to compile.
        # TODO(synk): add overlapping H-tiling for planes too large even at ct=1.
        compiler_kwargs["vmem_limit_bytes"] = int(vmem_est + (4 << 20))

    cost = pl.CostEstimate(
        flops=int(N * C * Ho * Wo * (k * k - 1)),
        transcendentals=0,
        bytes_accessed=int((N * C * H * W + N * C * Ho * Wo) * itemsize),
    )

    return pl.pallas_call(
        functools.partial(_maxpool_kernel, k=k, s=s),
        out_shape=jax.ShapeDtypeStruct((N, C, Ho, Wo), x.dtype),
        grid_spec=pltpu.PrefetchScalarGridSpec(
            num_scalar_prefetch=0,
            grid=grid,
            in_specs=[pl.BlockSpec((None, ct, H, W), lambda n, c: (n, c, 0, 0))],
            out_specs=pl.BlockSpec((None, ct, Ho, Wo), lambda n, c: (n, c, 0, 0)),
        ),
        compiler_params=pltpu.CompilerParams(**compiler_kwargs),
        cost_estimate=cost,
    )(x)


def _reference(x, kernel_size):
    """Pure-JAX reference mirroring the PyTorch forward."""
    k = int(kernel_size)
    pad = k - 1
    xp = jnp.pad(x, ((0, 0), (0, 0), (0, pad), (0, pad)), mode="edge")
    return jax.lax.reduce_window(
        xp,
        -jnp.inf,
        jax.lax.max,
        window_dimensions=(1, 1, k, k),
        window_strides=(1, 1, pad, pad),
        padding="VALID",
    )


if __name__ == "__main__":
    key = jax.random.PRNGKey(0)
    N, C, H, W = 2, 4, 16, 16
    kernel_size = 2   # canonical MaxPoolStride1 usage: stride 1, same-size output

    x = jax.random.normal(key, (N, C, H, W), dtype=jnp.float32)

    out = jax.block_until_ready(max_pool_stride1(x, kernel_size))

    ref = _reference(x, kernel_size)
    assert out.shape == ref.shape, (out.shape, ref.shape)
    assert jnp.allclose(out, ref), "mismatch vs reference"

    print("KERNEL_OK")
</pallas_src>

<mosaic_0001>
module attributes {stable_mosaic.version = 11 : i64} {
  func.func @_maxpool_kernel(%arg0: i32, %arg1: i32, %arg2: memref<1x1x16x16xf32, #tpu.memory_space<vmem>>, %arg3: memref<1x1x16x16xf32, #tpu.memory_space<vmem>>) attributes {dimension_semantics = [#tpu.dimension_semantics<parallel>, #tpu.dimension_semantics<parallel>], iteration_bounds = array<i64: 2, 4>, scalar_prefetch = 0 : i64, scratch_operands = 0 : i64, tpu.core_type = #tpu.core_type<tc>, window_params = [{transform_indices = @transform_0, window_bounds = array<i64: 1, 1, 16, 16>}, {transform_indices = @transform_1, window_bounds = array<i64: 1, 1, 16, 16>}]} {
    %c0 = arith.constant 0 : index
    %c0_0 = arith.constant 0 : index
    %c0_1 = arith.constant 0 : index
    %c0_2 = arith.constant 0 : index
    %0 = vector.load %arg2[%c0, %c0_0, %c0_1, %c0_2] : memref<1x1x16x16xf32, #tpu.memory_space<vmem>>, vector<1x1x16x16xf32>
    %1 = vector.shape_cast %0 : vector<1x1x16x16xf32> to vector<1x16x16xf32>
    %2 = vector.extract_strided_slice %1 {offsets = [0, 0, 1], sizes = [1, 16, 15], strides = [1, 1, 1]} : vector<1x16x16xf32> to vector<1x16x15xf32>
    %3 = vector.extract_strided_slice %1 {offsets = [0, 0, 15], sizes = [1, 16, 1], strides = [1, 1, 1]} : vector<1x16x16xf32> to vector<1x16x1xf32>
    %4 = tpu.concatenate %2, %3 in 2 : vector<1x16x15xf32>, vector<1x16x1xf32> -> vector<1x16x16xf32>
    %5 = arith.maximumf %1, %4 : vector<1x16x16xf32>
    %6 = vector.extract_strided_slice %5 {offsets = [0, 1, 0], sizes = [1, 15, 16], strides = [1, 1, 1]} : vector<1x16x16xf32> to vector<1x15x16xf32>
    %7 = vector.extract_strided_slice %5 {offsets = [0, 15, 0], sizes = [1, 1, 16], strides = [1, 1, 1]} : vector<1x16x16xf32> to vector<1x1x16xf32>
    %8 = tpu.concatenate %6, %7 in 1 : vector<1x15x16xf32>, vector<1x1x16xf32> -> vector<1x16x16xf32>
    %9 = arith.maximumf %5, %8 : vector<1x16x16xf32>
    %c0_3 = arith.constant 0 : index
    %c0_4 = arith.constant 0 : index
    %c0_5 = arith.constant 0 : index
    %c0_6 = arith.constant 0 : index
    %10 = vector.load %arg3[%c0_3, %c0_4, %c0_5, %c0_6] : memref<1x1x16x16xf32, #tpu.memory_space<vmem>>, vector<1x1x16x16xf32>
    %11 = vector.shape_cast %10 : vector<1x1x16x16xf32> to vector<1x16x16xf32>
    %12 = vector.shape_cast %9 : vector<1x16x16xf32> to vector<1x1x16x16xf32>
    tpu.vector_store %arg3[%c0_3, %c0_4, %c0_5, %c0_6], %12 {strides = array<i32>} : memref<1x1x16x16xf32, #tpu.memory_space<vmem>>, vector<1x1x16x16xf32>,
    return
  }
  func.func @transform_0(%arg0: i32, %arg1: i32) -> (i32, i32, i32, i32) {
    %c0_i32 = arith.constant 0 : i32
    %c0_i32_0 = arith.constant 0 : i32
    %c0_i32_1 = arith.constant 0 : i32
    return %arg0, %arg1, %c0_i32, %c0_i32_0 : i32, i32, i32, i32
  }
  func.func @transform_1(%arg0: i32, %arg1: i32) -> (i32, i32, i32, i32) {
    %c0_i32 = arith.constant 0 : i32
    %c0_i32_0 = arith.constant 0 : i32
    %c0_i32_1 = arith.constant 0 : i32
    return %arg0, %arg1, %c0_i32, %c0_i32_0 : i32, i32, i32, i32
  }
}

</mosaic_0001>

<bundles_post_ra>
// kernel: tpu_custom_call.1
= control target key start
LH: loop header
LB: loop body
LE: loop exit
PB: predicated region body
PF: predicated region fallthrough
CT: control target
= control target key end

     0   :  { %6 = vsyncpa [#allocation3], 0  ;;  %s679_s0 = inlined_call_operand.hbm [shape: f32[2,4,16,16], index: 0, kind: input, shape index: {}]   ;;  %s680_s1 = inlined_call_operand.hbm [shape: f32[2,4,16,16], index: 1, kind: output, shape index: {}]  }
   0x1   :  { %8 = vsyncpa [#allocation3 + $0x1], 0 }
   0x2   :  { %9 = vsyncpa [#allocation4], 0 }
   0x3   :  { %11 = vsyncpa [#allocation4 + $0x1], 0  ;;  %s537_s6 = smov 0   ;;  %s539_s7 = smov 0  }
   0x4   :  { %s541_s8 = smov 0   ;;  %s543_s9 = smov 0  }
   0x5   :  { %s545_s10 = smov 0   ;;  %s547_s11 = smov 0  }
   0x6   :  { %s549_s12 = smov 0   ;;  %s551_s13 = smov 0  }
   0x7 LB: > { %s292_s14 = sadd.s32 4294967295, %s520_s13   ;;  %s293_s15 = sadd.s32 4294967294, %s520_s13   ;;  %s520_s13 = sphi %s551_s13, %s17_s13   ;;  %s516_s12 = sphi %s549_s12, %s694_s12   ;;  %s512_s11 = sphi %s547_s11, %s693_s11   ;;  %s508_s10 = sphi %s545_s10, %s692_s10   ;;  %s504_s9 = sphi %s543_s9, %s691_s9   ;;  %s500_s8 = sphi %s541_s8, %s690_s8   ;;  %s496_s7 = sphi %s539_s7, %s689_s7   ;;  %s492_s6 = sphi %s537_s6, %s688_s6  }
   0x8   : > { %s26_s16 = sadd.s32 1, %s512_s11  ;;  %s29_s17 = sadd.s32 1, %s516_s12 }
   0x9   : > { %p27_p0 = scmp.ge.s32.totalorder %s26_s16, 4  ;;  %s38_s18 = sadd.s32 1, %s500_s8 }
   0xa   : > { %p45_p1 = scmp.ne.s32.totalorder %s500_s8, %s496_s7  ;;  %p46_p2 = scmp.eq.s32.totalorder %s520_s13, 0 }
   0xb   : > { %s696_s16 = smov (%p27_p0, %s26_s16), 0  ;;  %s698_s17 = smov (!%p27_p0, %s29_s17), %s516_s12 }
   0xc   : > { %s34_s19 = ssub.s32 %s512_s11, %s696_s16  ;;  %p590_p3 = por %p46_p2, %p45_p1 }
   0xd   : > { %p31_p4 = scmp.ge.s32.totalorder %s698_s17, 2  ;;  %p51_p5 = scmp.ne.s32.totalorder %s496_s7, %s492_s6 }
   0xe   : > { %p52_p6 = scmp.eq.s32.totalorder %s292_s14, 0  ;;  %p77_p7 = scmp.eq.s32.totalorder %s292_s14, 7 }
   0xf   : > { %s700_s17 = smov (%p31_p4, %s698_s17), 0  ;;  %p83_p10 = scmp.eq.s32.totalorder %s293_s15, 7 }
  0x10   : > { %683 = sst [smem:[#allocation8_spill]] %s700_s17  ;;  %p598_p8 = por %p52_p6, %p51_p5 }
  0x11   : > { %p602_p9 = por %p77_p7, %p45_p1  ;;  %s33_s23 = ssub.s32 %s516_s12, %s700_s17 }
  0x12   : > { %s35_s24 = sor.u32 %s34_s19, %s33_s23  ;;  %p608_p12 = por %p83_p10, %p51_p5 }
  0x13   : > { %p36_p11 = scmp.eq.s32.totalorder %s35_s24, 0  ;;  %p321_p13 = scmp.lt.s32.totalorder %s520_s13, 8 }
  0x14   : > { %s103_s26 = sand.u32 1, %s500_s8   ;;  %s297_s29 = sshll.u32 %s512_s11, 1 }
  0x15   : > { %s615_s27 = scalar_select %p36_p11, %s500_s8, %s38_s18  }
  0x16   : > { %s296_s28 = sshll.u32 %s103_s26, 4  ;;  %s298_s30 = sshll.u32 %s516_s12, 3 }
  0x17   : > { %s107_s2 = scalar_lea.vmem [#allocation2], %s296_s28  ;;  %s112_s4 = sadd.s32 %s298_s30, %s297_s29 }
  0x18   : > { %s117_s3 = sshll.u32 %s107_s2, 4  ;;  %s299_s5 = sshll.u32 %s112_s4, 3  ;;  %s118_s3 = int_to_ptr.vmem [resolvable:$true] %s117_s3 }
  0x19   : > { %p314_p0 = pnand %p321_p13, %p590_p3  ;;  %s114_s19 = scalar_lea.hbm %s679_s0, %s299_s5 }
  0x1a   : > { %s115_s23 = sshll.u32 %s114_s19, 4  ;;  %s104_s18 = scalar_lea.sflag [#allocation3], %s103_s26  ;;  %s116_s23 = int_to_ptr.hbm [resolvable:$true] %s115_s23 }
  0x1b   : > { %s522_s24 = smov 128   ;;  %s523_s17 = smov 8  }
  0x1c   : > { %316 = dma.hbm_to_vmem [thread:$0]  (!%p314_p0), %s116_s23, 256, %s118_s3, %s104_s18, %s522_s24, %s522_s24, %s523_s17  }
  0x1d   : > { %p300_p1 = scmp.ge.s32.totalorder %s520_s13, 1  ;;  %p125_p2 = scmp.lt.s32.totalorder %s520_s13, 9 }
  0x1f   : > { %p126_p4 = pnand %p300_p1, %p125_p2 }
  0x20   : > { %s627_s28 = sand.u32 (!%p126_p4), 1, %s496_s7  }
  0x21   : > { %129 = sbr.rel (%p126_p4) target bundleno = 176 (0xb0), region = 24  ;;  %s301_s20 = sshll.u32 (!%p126_p4), %s627_s28, 4 }
  0x22   : > { %s132_s29 = scalar_lea.sflag (!%p126_p4), [#allocation3], %s627_s28  ;;  %s135_s30 = scalar_lea.vmem (!%p126_p4), [#allocation2], %s301_s20 }
  0x26   : > { %483 = dma.done.wait (%p598_p8), %s132_s29, 256  }
  0x27   : > { %485 = vsyncadd (%p598_p8), %s132_s29, 4294967040  ;;  %v155_v0 = vld [vmem:[%s135_s30] sm:$0xff]  ;;  %s524_s17 = smov 127   ;;  %v156_v1 = vld [vmem:[%s135_s30 + $0x8] sm:$0xff]  ;;  %s304_s26 = sshll.u32 %s504_s9, 1  ;;  %vm165_vm0 = vcmask 121856  }
  0x28   : > { %159 = vrot.lane.b32.xlu0 %v155_v0, %s524_s17  ;;  %s305_s2 = sshll.u32 %s508_s10, 3  ;;  %vm172_vm1 = vcmask 1046528   ;;  %s154_s15 = scalar_lea.vmem [#allocation5], %s301_s20  ;;  %vm181_vm2 = vcmask 130048  }
  0x29   : > { %s196_s3 = sadd.s32 %s305_s2, %s304_s26  ;;  %s199_s19 = sshll.u32 %s154_s15, 4  ;;  %s200_s19 = int_to_ptr.vmem [resolvable:$true] %s199_s19 }
  0x2a   : > { %s306_s4 = sshll.u32 %s196_s3, 3  ;;  %s185_s10 = scalar_lea.sflag [#allocation4], %s627_s28 }
  0x2b   : > { %s198_s14 = scalar_lea.hbm %s680_s1, %s306_s4  ;;  %s442_s29 = scalar_lea.hbm %s680_s1, 128 }
  0x2c   : > { %s201_s9 = sshll.u32 %s198_s14, 4  ;;  %s202_s9 = int_to_ptr.hbm [resolvable:$true] %s201_s9 }
  0x2d   : > { %s436_s23 = sshra.s32 %s202_s9, 4  ;;  %s437_s23 = int_to_ptr.hbm [resolvable:$true] %s436_s23 }
  0x2e   : > { %s438_s18 = scalar_lea.hbm %s437_s23, 16  ;;  %p443_p7 = scmp.lt.s32.totalorder %s437_s23, %s680_s1 }
  0x2f   : > { %p439_p3 = scmp.ne.s32.totalorder %s437_s23, %s438_s18  ;;  %p444_p8 = scmp.lt.s32.totalorder %s442_s29, %s438_s18 }
  0x30   : > { %161 = vrot.lane.b32.xlu0 %v156_v1, %s524_s17 }
  0x31   : > { %p440_p5 = pnand %p439_p3, %p602_p9  ;;  %p445_p10 = por %p444_p8, %p443_p7 }
  0x33   : > { %p441_p6 = pneg %p440_p5 }
  0x35   : > { %p446_p11 = pnand %p445_p10, %p441_p6 }
  0x9a   : > { %v160_v2 = vpop.permute.xlu0 %159 }
  0x9b   : > { %v166_v3 = vsel %vm165_vm0, %v160_v2, %v155_v0 }
  0x9c   : > { %v168_v4 = vmax.f32 %v155_v0, %v166_v3 }
  0x9e   : > { %v173_v8 = vrot.slane %v168_v4, 1 }
  0xa2   : > { %v162_v5 = vpop.permute.xlu0 %161 }
  0xa3   : > { %v167_v6 = vsel %vm165_vm0, %v162_v5, %v156_v1 }
  0xa4   : > { %v169_v7 = vmax.f32 %v156_v1, %v167_v6 }
  0xa6   : > { %v174_v9 = vrot.slane %v169_v7, 1 }
  0xa8   : > { %v175_v10 = vsel %vm172_vm1, %v173_v8, %v174_v9  ;;  %v178_v11 = vsel %vm172_vm1, %v174_v9, %v169_v7 }
  0xa9   : > { %v179_v12 = vmax.f32 %v168_v4, %v175_v10  ;;  %v180_v13 = vmax.f32 %v169_v7, %v178_v11 }
  0xab   : > { %183 = vst.msk [vmem:[%s154_s15 + $0x8] sm:$0xff] %vm181_vm2, %v180_v13 }
  0xac   : > { %182 = vst.msk [vmem:[%s154_s15] sm:$0xff] %vm181_vm2, %v179_v12 }
  0xad   : > { %449 = shalt.err (!%p446_p11)
}
  0xae   : > { %s525_s28 = smov 128   ;;  %s526_s26 = smov 8  }
  0xaf   : > { %311 = dma.vmem_to_hbm [thread:$0]  (%p602_p9), %s200_s19, 256, %s202_s9, %s185_s10, %s525_s28, %s525_s28, %s526_s26  }
  0xb0 PF: > { %p322_p13 = scmp.ge.s32.totalorder %s520_s13, 2  ;;  %s216_s2 = sand.u32 1, %s492_s6  }
  0xb1   : > { %s217_s3 = scalar_lea.sflag [#allocation4], %s216_s2 }
  0xb2   : > { %p318_p0 = pnand %p322_p13, %p608_p12 }
  0xb4   : > { %p319_p1 = pneg %p318_p0 }
  0xb6   : > { %487 = dma.done.wait (%p319_p1), %s217_s3, 256  }
  0xb7   : > { %489 = vsyncadd (%p319_p1), %s217_s3, 4294967040  ;;  %s17_s13 = sadd.s32 1, %s520_s13   ;;  %s687_s22 = sld [smem:[#allocation8_spill]] }
  0xb8   : > { %p14_p2 = scmp.ge.s32.totalorder %s17_s13, 10   ;;  %s688_s6 = smov %s496_s7 }
  0xb9   : > { %s689_s7 = smov %s500_s8  ;;  %s690_s8 = smov %s615_s27 }
  0xba   : > { %s691_s9 = smov %s512_s11  ;;  %s692_s10 = smov %s516_s12 }
  0xbb   : > { %s693_s11 = smov %s696_s16  ;;  %16 = sbr.rel (!%p14_p2) target bundleno = 7 (0x7), region = 69 }
  0xbd   : > { %s694_s12 = smov %s687_s22 }
  0xc0   :  { %223 = vsyncpa [#allocation3], 1 }
  0xc1   :  { %225 = vsyncpa [#allocation3 + $0x1], 1 }
  0xc2   :  { %226 = vsyncpa [#allocation4], 1 }
  0xc3   :  { %228 = vsyncpa [#allocation4 + $0x1], 1 }

</bundles_post_ra>
